<compile_context>
chip_gen: v7x
topology: tpu7x:2x2x1
jax: 0.10.0
libtpu: 0.0.40
codegen_flags: <defaults>
</compile_context>

<pallas_src>
import math

import jax
import jax.numpy as jnp
from jax.experimental import pallas as pl
from jax.experimental.pallas import tpu as pltpu

_LANE = 128
_TARGET_TILE_BYTES = 4 * 1024 * 1024   # ~4 MiB f32 output block per buffer


def _choose_tl(L, d):
    """Pick a lane-dense length-tile that is VMEM-safe on v5e/v6e/v7x."""
    if L <= _LANE:
        # Single full-extent block (block dim == array dim, always legal).
        return L
    tl = max(_LANE, (_TARGET_TILE_BYTES // (4 * d)) // _LANE * _LANE)
    l_ceil = -(-L // _LANE) * _LANE
    tl = min(tl, l_ceil)
    if tl >= l_ceil:
        # Keep >= 2 grid tiles so the "parallel" length axis can be split
        # across v7x's two TensorCores; neutral on single-TC v5e/v6e.
        half = -(-((L + 1) // 2) // _LANE) * _LANE
        tl = max(_LANE, min(tl, half))
    return tl


def _sincos_kernel(pos_ref, div_ref, parity_ref, out_ref):
    # pos_ref:    (1, TL)  positions for this length-tile
    # div_ref:    (d, 1)   per-row divisor: row i uses div_term[i // 2]
    # parity_ref: (d, 1)   0.0 for even rows (sin), 1.0 for odd rows (cos)
    # out_ref:    (d, TL)  interleaved sin/cos encoding
    angle = div_ref[...] * pos_ref[...]                  # (d,1)*(1,TL) -> (d,TL)
    out_ref[...] = jnp.where(parity_ref[...] == 0.0,
                             jnp.sin(angle),
                             jnp.cos(angle))


def sincos_encoding(positions, d, n=10000.0, tl=None):
    """positions: (1, 1, L) array. Returns (1, d, L) float32 encoding."""
    assert positions.ndim == 3 and positions.shape[0] == 1 and positions.shape[1] == 1
    assert d % 2 == 0
    L = positions.shape[2]

    # ---- parameter setup (mirrors module __init__; pure glue) ----------------
    div_half = jnp.exp(
        jnp.arange(0, d, 2, dtype=jnp.float32) * (-math.log(float(n)) / d)
    )                                                            # (d/2,)
    div_full = jnp.repeat(div_half, 2)[:, None]                  # (d, 1): row i -> div[i//2]
    parity = (jnp.arange(d, dtype=jnp.int32) % 2).astype(jnp.float32)[:, None]  # (d, 1)

    # ---- tile sizing ---------------------------------------------------------
    if tl is None:
        tl = _choose_tl(L, d)
    assert tl == L or tl % _LANE == 0
    num_tiles = pl.cdiv(L, tl)

    pos2d = positions.reshape(1, L).astype(jnp.float32)

    out2d = pl.pallas_call(
        _sincos_kernel,
        out_shape=jax.ShapeDtypeStruct((d, L), jnp.float32),
        grid=(num_tiles,),
        in_specs=[
            pl.BlockSpec((1, tl), lambda j: (0, j)),   # positions strip for this tile
            pl.BlockSpec((d, 1), lambda j: (0, 0)),    # divisor (resident)
            pl.BlockSpec((d, 1), lambda j: (0, 0)),    # parity  (resident)
        ],
        out_specs=pl.BlockSpec((d, tl), lambda j: (0, j)),
        compiler_params=pltpu.CompilerParams(
            dimension_semantics=("parallel",)
        ),
    )(pos2d, div_full, parity)

    return out2d[None, :, :]                                     # (1, d, L)


def _reference(positions, d, n=10000.0):
    """Pure-JAX reference reproducing the PyTorch forward."""
    L = positions.shape[2]
    div_term = jnp.exp(
        jnp.arange(0, d, 2, dtype=jnp.float32) * (-math.log(float(n)) / d)
    )[None, :, None]                                             # (1, d/2, 1)
    angle = positions.astype(jnp.float32) * div_term             # (1, d/2, L)
    pe = jnp.zeros((1, d, L), dtype=jnp.float32)
    pe = pe.at[:, 0::2, :].set(jnp.sin(angle))
    pe = pe.at[:, 1::2, :].set(jnp.cos(angle))
    return pe


if __name__ == "__main__":
    key = jax.random.PRNGKey(0)

    # Case 1: small demo shape (single full-extent block, L < 128).
    d, L = 32, 16
    positions = jax.random.uniform(
        key, (1, 1, L), dtype=jnp.float32, minval=0.0, maxval=float(L)
    )
    out = jax.block_until_ready(sincos_encoding(positions, d))
    ref = _reference(positions, d)
    assert out.shape == (1, d, L) and out.dtype == jnp.float32
    assert jnp.allclose(out, ref, atol=1e-5, rtol=1e-5), "mismatch vs reference (case 1)"

    # Case 2: realistic integer positions, multi-tile grid + masked partial
    # final block (L=300 -> TL=256, 2 tiles). The kernel evaluates the exact
    # same f32 products and sin/cos as the reference; the tolerance only
    # covers possible few-ulp argument-reduction differences between the
    # in-kernel and XLA transcendental expansions at |angle| ~ 300.
    d2, L2 = 64, 300
    positions2 = jnp.arange(L2, dtype=jnp.float32).reshape(1, 1, L2)
    out2 = jax.block_until_ready(sincos_encoding(positions2, d2))
    ref2 = _reference(positions2, d2)
    assert out2.shape == (1, d2, L2) and out2.dtype == jnp.float32
    assert jnp.allclose(out2, ref2, atol=1e-4, rtol=1e-4), "mismatch vs reference (case 2)"

    print("KERNEL_OK")
</pallas_src>

<mosaic_0001>
module attributes {stable_mosaic.version = 11 : i64} {
  func.func @_sincos_kernel(%arg0: i32, %arg1: memref<1x16xf32, #tpu.memory_space<vmem>>, %arg2: memref<32x1xf32, #tpu.memory_space<vmem>>, %arg3: memref<32x1xf32, #tpu.memory_space<vmem>>, %arg4: memref<32x16xf32, #tpu.memory_space<vmem>>) attributes {dimension_semantics = [#tpu.dimension_semantics<parallel>], iteration_bounds = array<i64: 1>, scalar_prefetch = 0 : i64, scratch_operands = 0 : i64, tpu.core_type = #tpu.core_type<tc>, window_params = [{transform_indices = @transform_0, window_bounds = array<i64: 1, 16>}, {pipeline_mode = #tpu.pipeline_mode<synchronous>, transform_indices = @transform_1, window_bounds = array<i64: 32, 1>}, {pipeline_mode = #tpu.pipeline_mode<synchronous>, transform_indices = @transform_2, window_bounds = array<i64: 32, 1>}, {transform_indices = @transform_3, window_bounds = array<i64: 32, 16>}]} {
    %c0 = arith.constant 0 : index
    %c0_0 = arith.constant 0 : index
    %0 = vector.load %arg2[%c0, %c0_0] : memref<32x1xf32, #tpu.memory_space<vmem>>, vector<32x1xf32>
    %c0_1 = arith.constant 0 : index
    %c0_2 = arith.constant 0 : index
    %1 = vector.load %arg1[%c0_1, %c0_2] : memref<1x16xf32, #tpu.memory_space<vmem>>, vector<1x16xf32>
    %2 = vector.broadcast %0 : vector<32x1xf32> to vector<32x16xf32>
    %3 = vector.broadcast %1 : vector<1x16xf32> to vector<32x16xf32>
    %4 = arith.mulf %2, %3 : vector<32x16xf32>
    %c0_3 = arith.constant 0 : index
    %c0_4 = arith.constant 0 : index
    %5 = vector.load %arg3[%c0_3, %c0_4] : memref<32x1xf32, #tpu.memory_space<vmem>>, vector<32x1xf32>
    %cst = arith.constant 0.000000e+00 : f32
    %6 = vector.broadcast %cst : f32 to vector<32x1xf32>
    %7 = arith.cmpf oeq, %5, %6 : vector<32x1xf32>
    %8 = math.sin %4 : vector<32x16xf32>
    %9 = math.cos %4 : vector<32x16xf32>
    %10 = vector.shape_cast %7 : vector<32x1xi1> to vector<32x1xi1>
    %11 = vector.broadcast %10 : vector<32x1xi1> to vector<32x16xi1>
    %12 = arith.select %11, %8, %9 : vector<32x16xi1>, vector<32x16xf32>
    %c0_5 = arith.constant 0 : index
    %c0_6 = arith.constant 0 : index
    %13 = vector.load %arg4[%c0_5, %c0_6] : memref<32x16xf32, #tpu.memory_space<vmem>>, vector<32x16xf32>
    tpu.vector_store %arg4[%c0_5, %c0_6], %12 {strides = array<i32>} : memref<32x16xf32, #tpu.memory_space<vmem>>, vector<32x16xf32>,
    return
  }
  func.func @transform_0(%arg0: i32) -> (i32, i32) {
    %c0_i32 = arith.constant 0 : i32
    %c0_i32_0 = arith.constant 0 : i32
    return %c0_i32, %arg0 : i32, i32
  }
  func.func @transform_1(%arg0: i32) -> (i32, i32) {
    %c0_i32 = arith.constant 0 : i32
    %c0_i32_0 = arith.constant 0 : i32
    %c0_i32_1 = arith.constant 0 : i32
    return %c0_i32, %c0_i32_0 : i32, i32
  }
  func.func @transform_2(%arg0: i32) -> (i32, i32) {
    %c0_i32 = arith.constant 0 : i32
    %c0_i32_0 = arith.constant 0 : i32
    %c0_i32_1 = arith.constant 0 : i32
    return %c0_i32, %c0_i32_0 : i32, i32
  }
  func.func @transform_3(%arg0: i32) -> (i32, i32) {
    %c0_i32 = arith.constant 0 : i32
    %c0_i32_0 = arith.constant 0 : i32
    return %c0_i32, %arg0 : i32, i32
  }
}

</mosaic_0001>

<bundles_post_ra>
// kernel: tpu_custom_call.1
= control target key start
LH: loop header
LB: loop body
LE: loop exit
PB: predicated region body
PF: predicated region fallthrough
CT: control target
= control target key end

     0   :  { %v992_v0 = vmov 0   ;;  %v993_v52 = vmov 683565275   ;;  %v994_v54 = vmov 2475754826   ;;  %s1367_s1 = inlined_call_operand.vmem [shape: f32[32,1], index: 1, kind: input, shape index: {}]   ;;  %s1368_s2 = inlined_call_operand.vmem [shape: f32[32,1], index: 2, kind: input, shape index: {}]   ;;  %s1369_s0 = inlined_call_operand.vmem [shape: f32[1,16], index: 0, kind: input, shape index: {}]   ;;  %s1370_s3 = inlined_call_operand.vmem [shape: f32[32,16], index: 3, kind: output, shape index: {}]  }
   0x1   :  { %975 = vset.pattern.permute.xlu1 %v992_v0  ;;  %974 = vset.pattern.permute.xlu0 %v992_v0  ;;  %v16_v1 = vld [vmem:[%s1367_s1 + $0x10] sm:$0xff]  ;;  %v14_v2 = vld [vmem:[%s1367_s1] sm:$0xff]  ;;  %v50_v3 = vld [vmem:[%s1368_s2 + $0x8] sm:$0xff]  ;;  %v995_v57 = vmov 2131351028  }
   0x2   :  { %31 = vperm.xlu1 %975, %v16_v1   ;;  %21 = vperm.xlu0 %974, %v14_v2   ;;  %v49_v4 = vld [vmem:[%s1368_s2] sm:$0xff]  ;;  %v17_v5 = vld [vmem:[%s1367_s1 + $0x18] sm:$0xff]  ;;  %v15_v6 = vld [vmem:[%s1367_s1 + $0x8] sm:$0xff]  ;;  %vm54_vm0 = vcmp.eq.f32.partialorder %v50_v3, 0.0  ;;  %v996_v59 = vmov 2102212464  }
   0x3   :  { %vm53_vm1 = vcmp.eq.f32.partialorder %v49_v4, 0.0  ;;  %v52_v7 = vld [vmem:[%s1368_s2 + $0x18] sm:$0xff]  ;;  %v51_v8 = vld [vmem:[%s1368_s2 + $0x10] sm:$0xff]  ;;  %v886_v9 = vsel %vm54_vm0, 1, %v992_v0  ;;  %v918_v13 = vld [vmem:[%s1369_s0] ss:$0 sm:$0xff] }
   0x4   :  { %v885_v10 = vsel %vm53_vm1, 1, %v992_v0  ;;  %vm56_vm2 = vcmp.eq.f32.partialorder %v52_v7, 0.0  ;;  %vm55_vm3 = vcmp.eq.f32.partialorder %v51_v8, 0.0  ;;  %v997_v61 = vmov 920167782  }
   0x5   :  { %v888_v11 = vsel %vm56_vm2, 1, %v992_v0  ;;  %v887_v12 = vsel %vm55_vm3, 1, %v992_v0  ;;  %v998_v4 = vmov 1326507024  }
   0x6   :  { %36 = vperm.xlu1 %975, %v17_v5   ;;  %26 = vperm.xlu0 %974, %v15_v6  }
   0xa   :  { %893 = vperm.xlu1 %975, %v886_v9   ;;  %890 = vperm.xlu0 %974, %v885_v10  }
   0xe   :  { %899 = vperm.xlu1 %975, %v888_v11   ;;  %896 = vperm.xlu0 %974, %v887_v12  }
  0x81   :  { %v32_v14 = vpop.permute.xlu1 %31  ;;  %v22_v15 = vpop.permute.xlu0 %21 }
  0x82   :  { %v1046_v16 = vmul.f32 %v918_v13, %v32_v14  ;;  %v1048_v17 = vmul.f32 %v918_v13, %v22_v15 }
  0x84   :  { %v265_v18 = vand.u32 2147483647, %v1046_v16  ;;  %v268_v19 = vand.u32 2139095040, %v1046_v16  ;;  %v57_v20 = vand.u32 2147483647, %v1048_v17  ;;  %v60_v21 = vand.u32 2139095040, %v1048_v17 }
  0x85   :  { %v37_v22 = vpop.permute.xlu1 %36  ;;  %v27_v26 = vpop.permute.xlu0 %26 }
  0x86   :  { %v269_v23 = vshrl.u32 %v268_v19, 23  ;;  %v272_v24 = vand.u32 8388607, %v265_v18  ;;  %v1056_v25 = vmul.f32 %v918_v13, %v37_v22  ;;  %v61_v27 = vshrl.u32 %v60_v21, 23 }
  0x87   :  { %v64_v28 = vand.u32 8388607, %v57_v20  ;;  %v1062_v33 = vmul.f32 %v918_v13, %v27_v26 }
  0x88   :  { %v927_v29 = vadd.s32 4294967169, %v269_v23  ;;  %v369_v30 = vand.u32 2147483647, %v1056_v25  ;;  %v919_v31 = vadd.s32 4294967169, %v61_v27  ;;  %v372_v32 = vand.u32 2139095040, %v1056_v25 }
  0x89   :  { %v273_v34 = vor.u32 8388608, %v272_v24  ;;  %v65_v36 = vor.u32 8388608, %v64_v28  ;;  %v161_v42 = vand.u32 2147483647, %v1062_v33 }
  0x8a   :  { %v275_v35 = vadd.s32 1, %v927_v29  ;;  %v67_v37 = vadd.s32 1, %v919_v31  ;;  %v373_v38 = vshrl.u32 %v372_v32, 23  ;;  %v1066_v39 = vand.u32 8388607, %v369_v30 }
  0x8b   :  { %v1069_v45 = vshll.u32 %v273_v34, 8  ;;  %v1073_v49 = vshll.u32 %v65_v36, 8 }
  0x8c   :  { %vm276_vm4 = vcmp.gt.s32.totalorder %v275_v35, 0  ;;  %vm68_vm5 = vcmp.gt.s32.totalorder %v67_v37, 0  ;;  %v931_v41 = vadd.s32 4294967169, %v373_v38  ;;  %v377_v50 = vor.u32 8388608, %v1066_v39 }
  0x8d   :  { %v277_v40 = vsel %vm276_vm4, %v275_v35, 0  ;;  %v69_v46 = vsel %vm68_vm5, %v67_v37, 0 }
  0x8e   :  { %v278_v43 = vshrl.u32 %v277_v40, 5  ;;  %v279_v44 = vand.u32 31, %v277_v40  ;;  %v1071_v47 = vshrl.u32 %v69_v46, 5  ;;  %v71_v48 = vand.u32 31, %v69_v46 }
  0x8f   :  { %v1078_v56 = vadd.s32 1, %v931_v41 }
  0x90   :  { %v280_v51 = vsub.s32 32, %v279_v44  ;;  %v282_v53 = vshll.u32 %v993_v52, %v279_v44  ;;  %v285_v55 = vshll.u32 %v994_v54, %v279_v44  ;;  %v288_v58 = vshll.u32 %v995_v57, %v279_v44 }
  0x91   :  { %v291_v60 = vshll.u32 %v996_v59, %v279_v44  ;;  %v294_v62 = vshll.u32 %v997_v61, %v279_v44  ;;  %vm297_vm6 = vcmp.lt.s32.totalorder %v278_v43, 1  ;;  %vm298_vm7 = vcmp.lt.s32.totalorder %v278_v43, 2 }
  0x92   :  { %v283_v63 = vshrl.u32 %v994_v54, %v280_v51  ;;  %v286_v0 = vshrl.u32 %v995_v57, %v280_v51  ;;  %v289_v1 = vshrl.u32 %v996_v59, %v280_v51  ;;  %v281_v2 = vshrl.u32 %v993_v52, %v280_v51 }
  0x93   :  { %v292_v3 = vshrl.u32 %v997_v61, %v280_v51  ;;  %v295_v5 = vshrl.u32 %v998_v4, %v280_v51  ;;  %vm299_vm8 = vcmp.lt.s32.totalorder %v278_v43, 3  ;;  %v72_v9 = vsub.s32 32, %v71_v48 }
  0x94   :  { %v284_v6 = vor.u32 %v283_v63, %v282_v53  ;;  %v287_v7 = vor.u32 %v286_v0, %v285_v55  ;;  %v290_v8 = vor.u32 %v289_v1, %v288_v58  ;;  %vm300_vm9 = vcmp.lt.s32.totalorder %v278_v43, 4 }
  0x95   :  { %v293_v10 = vor.u32 %v292_v3, %v291_v60  ;;  %v296_v11 = vor.u32 %v295_v5, %v294_v62  ;;  %v74_v12 = vshll.u32 %v993_v52, %v71_v48  ;;  %v77_v24 = vshll.u32 %v994_v54, %v71_v48 }
  0x96   :  { %v301_v13 = vsel %vm297_vm6, %v281_v2, %v284_v6  ;;  %v302_v14 = vsel %vm300_vm9, %v290_v8, 2102212464  ;;  %v305_v15 = vsel %vm297_vm6, %v284_v6, %v287_v7  ;;  %v309_v19 = vsel %vm297_vm6, %v287_v7, %v290_v8 }
  0x97   :  { %v303_v21 = vsel %vm299_vm8, %v287_v7, %v302_v14  ;;  %v306_v22 = vsel %vm300_vm9, %v293_v10, 920167782  ;;  %v310_v23 = vsel %vm300_vm9, %v296_v11, 1326507024  ;;  %v73_v28 = vshrl.u32 %v993_v52, %v72_v9 }
  0x98   :  { %v307_v26 = vsel %vm299_vm8, %v290_v8, %v306_v22  ;;  %v311_v27 = vsel %vm299_vm8, %v293_v10, %v310_v23  ;;  %v75_v29 = vshrl.u32 %v994_v54, %v72_v9  ;;  %v304_v31 = vsel %vm298_vm7, %v301_v13, %v303_v21 }
  0x99   :  { %v308_v32 = vsel %vm298_vm7, %v305_v15, %v307_v26  ;;  %v312_v34 = vsel %vm298_vm7, %v309_v19, %v311_v27  ;;  %v78_v35 = vshrl.u32 %v995_v57, %v72_v9  ;;  %v80_v46 = vshll.u32 %v995_v57, %v71_v48 }
  0x9a   :  { %v1104_v36 = vmul.u32.u64.low %v1069_v45, %v312_v34  ;;  %v1105_v37 = vmul.u32.u64.high %v1069_v45, %v312_v34, %v1104_v36  ;;  %v1108_v38 = vmul.u32.u64.low %v1069_v45, %v308_v32  ;;  %v1109_v40 = vmul.u32.u64.high %v1069_v45, %v308_v32, %v1108_v38 }
  0x9b   :  { %v76_v41 = vor.u32 %v75_v29, %v74_v12  ;;  %v79_v44 = vor.u32 %v78_v35, %v77_v24  ;;  %v81_v51 = vshrl.u32 %v996_v59, %v72_v9  ;;  %v320_v53 = vmul.u32 %v1069_v45, %v304_v31 }
  0x9c   :  { %v83_v43 = vshll.u32 %v996_v59, %v71_v48  ;;  %v84_v55 = vshrl.u32 %v997_v61, %v72_v9  ;;  %v87_v58 = vshrl.u32 %v998_v4, %v72_v9  ;;  %v86_v62 = vshll.u32 %v997_v61, %v71_v48 }
  0x9d   :  { %v82_v60 = vor.u32 %v81_v51, %v80_v46  ;;  %vm89_vm10 = vcmp.lt.s32.totalorder %v1071_v47, 1  ;;  %vm90_vm11 = vcmp.lt.s32.totalorder %v1071_v47, 2  ;;  %vm322_vm12 = vc.u32 %v1105_v37, %v1108_v38 }
  0x9e   :  { %v323_v63 = vadd.s32 1, %v1109_v40  ;;  %v85_v0 = vor.u32 %v84_v55, %v83_v43  ;;  %vm91_vm13 = vcmp.lt.s32.totalorder %v1071_v47, 3  ;;  %v88_v45 = vor.u32 %v87_v58, %v86_v62 }
  0x9f   :  { %vm92_vm14 = vcmp.lt.s32.totalorder %v1071_v47, 4  ;;  %v93_v1 = vsel %vm89_vm10, %v73_v28, %v76_v41  ;;  %v97_v2 = vsel %vm89_vm10, %v76_v41, %v79_v44  ;;  %v101_v6 = vsel %vm89_vm10, %v79_v44, %v82_v60 }
  0xa0   :  { %v324_v3 = vsel %vm322_vm12, %v323_v63, %v1109_v40  ;;  %v94_v5 = vsel %vm92_vm14, %v82_v60, 2102212464  ;;  %v98_v48 = vsel %vm92_vm14, %v85_v0, 920167782  ;;  %v102_v10 = vsel %vm92_vm14, %v88_v45, 1326507024 }
  0xa1   :  { %v325_v7 = vadd.s32 %v324_v3, %v320_v53  ;;  %v95_v8 = vsel %vm91_vm13, %v79_v44, %v94_v5  ;;  %v99_v9 = vsel %vm91_vm13, %v82_v60, %v98_v48  ;;  %v103_v12 = vsel %vm91_vm13, %v85_v0, %v102_v10 }
  0xa2   :  { %v100_v11 = vsel %vm90_vm11, %v97_v2, %v99_v9  ;;  %vm380_vm15 = vcmp.gt.s32.totalorder %v1078_v56, 0  ;;  %v164_v13 = vand.u32 2139095040, %v1062_v33  ;;  %v104_v15 = vsel %vm90_vm11, %v101_v6, %v103_v12 }
  0xa3   :  { %v326_v14 = vadd.s32 536870912, %v325_v7  ;;  %v1132_v19 = vmul.u32.u64.low %v1073_v49, %v100_v11  ;;  %v1133_v21 = vmul.u32.u64.high %v1073_v49, %v100_v11, %v1132_v19  ;;  %v96_v22 = vsel %vm90_vm11, %v93_v1, %v95_v8 }
  0xa4   :  { %v1139_v23 = vmul.u32.u64.low %v1073_v49, %v104_v15  ;;  %v1140_v24 = vmul.u32.u64.high %v1073_v49, %v104_v15, %v1139_v23  ;;  %v381_v26 = vsel %vm380_vm15, %v1078_v56, 0  ;;  %v1146_v29 = vadd.s32 %v1108_v38, %v1105_v37 }
  0xa5   :  { %v1143_v27 = vshrl.u32 %v326_v14, 30  ;;  %v383_v28 = vand.u32 31, %v381_v26  ;;  %v1150_v31 = vshll.u32 %v377_v50, 8  ;;  %v165_v32 = vshrl.u32 %v164_v13, 23 }
  0xa6   :  { %v1154_v47 = vand.u32 8388607, %v161_v42  ;;  %v112_v35 = vmul.u32 %v1073_v49, %v96_v22  ;;  %v115_v56 = vadd.s32 1, %v1133_v21  ;;  %vm114_vm0 = vc.u32 %v1140_v24, %v1132_v19 }
  0xa7   :  { %v328_v34 = vshll.u32 %v1143_v27, 30  ;;  %v384_v36 = vsub.s32 32, %v383_v28  ;;  %v382_v37 = vshrl.u32 %v381_v26, 5  ;;  %v386_v39 = vshll.u32 %v993_v52, %v383_v28 }
  0xa8   :  { %v389_v50 = vshll.u32 %v994_v54, %v383_v28  ;;  %v116_v40 = vsel %vm114_vm0, %v115_v56, %v1133_v21  ;;  %v392_v44 = vshll.u32 %v995_v57, %v383_v28  ;;  %v395_v53 = vshll.u32 %v996_v59, %v383_v28 }
  0xa9   :  { %v1163_v38 = vsub.s32 %v325_v7, %v328_v34  ;;  %v387_v41 = vshrl.u32 %v994_v54, %v384_v36  ;;  %v117_v49 = vadd.s32 %v116_v40, %v112_v35  ;;  %v390_v46 = vshrl.u32 %v995_v57, %v384_v36 }
  0xaa   :  { %v393_v51 = vshrl.u32 %v996_v59, %v384_v36  ;;  %v396_v58 = vshrl.u32 %v997_v61, %v384_v36  ;;  %v398_v60 = vshll.u32 %v997_v61, %v383_v28  ;;  %v399_v45 = vshrl.u32 %v998_v4, %v384_v36 }
  0xab   :  { %v331_v43 = vsub.s32 0, %v1163_v38  ;;  %v388_v55 = vor.u32 %v387_v41, %v386_v39  ;;  %v118_v62 = vadd.s32 536870912, %v117_v49  ;;  %v391_v63 = vor.u32 %v390_v46, %v389_v50 }
  0xac   :  { %v394_v0 = vor.u32 %v393_v51, %v392_v44  ;;  %v385_v2 = vshrl.u32 %v993_v52, %v384_v36  ;;  %v397_v3 = vor.u32 %v396_v58, %v395_v53  ;;  %v923_v5 = vadd.s32 4294967169, %v165_v32 }
  0xad   :  { %v928_v1 = vmin.u32 %v331_v43, %v1163_v38  ;;  %v1177_v48 = vshrl.u32 %v118_v62, 30  ;;  %v400_v6 = vor.u32 %v399_v45, %v398_v60  ;;  %vm401_vm1 = vcmp.lt.s32.totalorder %v382_v37, 1 }
  0xae   :  { %vm404_vm2 = vcmp.lt.s32.totalorder %v382_v37, 4  ;;  %vm402_vm3 = vcmp.lt.s32.totalorder %v382_v37, 2  ;;  %v409_v9 = vsel %vm401_vm1, %v388_v55, %v391_v63  ;;  %vm403_vm4 = vcmp.lt.s32.totalorder %v382_v37, 3 }
  0xaf   :  { %v333_v7 = vclz %v928_v1  ;;  %v406_v8 = vsel %vm404_vm2, %v394_v0, 2102212464  ;;  %v120_v10 = vshll.u32 %v1177_v48, 30  ;;  %v410_v11 = vsel %vm404_vm2, %v397_v3, 920167782 }
  0xb0   :  { %v413_v12 = vsel %vm401_vm1, %v391_v63, %v394_v0  ;;  %v405_v14 = vsel %vm401_vm1, %v385_v2, %v388_v55  ;;  %v411_v15 = vsel %vm403_vm4, %v394_v0, %v410_v11  ;;  %v414_v21 = vsel %vm404_vm2, %v400_v6, 1326507024 }
  0xb1   :  { %v929_v13 = vadd.s32 4294967294, %v333_v7  ;;  %v1180_v22 = vsub.s32 %v117_v49, %v120_v10  ;;  %v407_v23 = vsel %vm403_vm4, %v391_v63, %v406_v8  ;;  %v412_v26 = vsel %vm402_vm3, %v409_v9, %v411_v15 }
  0xb2   :  { %v415_v28 = vsel %vm403_vm4, %v397_v3, %v414_v21  ;;  %v1185_v34 = vmul.u32.u64.low %v1150_v31, %v412_v26  ;;  %v1186_v35 = vmul.u32.u64.high %v1150_v31, %v412_v26, %v1185_v34  ;;  %v408_v44 = vsel %vm402_vm3, %v405_v14, %v407_v23 }
  0xb3   :  { %vm930_vm5 = vcmp.lt.s32.totalorder %v929_v13, 0  ;;  %v416_v32 = vsel %vm402_vm3, %v413_v12, %v415_v28  ;;  %v123_v36 = vsub.s32 0, %v1180_v22  ;;  %v171_v49 = vadd.s32 1, %v923_v5 }
  0xb4   :  { %v336_v56 = vsel %vm930_vm5, 0, %v929_v13  ;;  %v1191_v39 = vmul.u32.u64.low %v1150_v31, %v416_v32  ;;  %v1192_v50 = vmul.u32.u64.high %v1150_v31, %v416_v32, %v1191_v39  ;;  %v169_v53 = vor.u32 8388608, %v1154_v47 }
  0xb5   :  { %v337_v40 = vsub.s32 32, %v336_v56  ;;  %v341_v41 = vsub.s32 4294967266, %v336_v56  ;;  %v338_v46 = vshll.u32 %v1163_v38, %v336_v56  ;;  %v920_v51 = vmin.u32 %v123_v36, %v1180_v22 }
  0xb6   :  { %v427_v58 = vadd.s32 1, %v1186_v35  ;;  %vm172_vm6 = vcmp.gt.s32.totalorder %v171_v49, 0  ;;  %v424_v62 = vmul.u32 %v1150_v31, %v408_v44  ;;  %vm426_vm7 = vc.u32 %v1192_v50, %v1185_v34 }
  0xb7   :  { %v339_v43 = vshrl.u32 %v1146_v29, %v337_v40  ;;  %v342_v55 = vadd.s32 127, %v341_v41  ;;  %v125_v60 = vclz %v920_v51  ;;  %v173_v37 = vsel %vm172_vm6, %v171_v49, 0 }
  0xb8   :  { %v428_v38 = vsel %vm426_vm7, %v427_v58, %v1186_v35  ;;  %v1204_v47 = vshrl.u32 %v173_v37, 5  ;;  %v175_v29 = vand.u32 31, %v173_v37  ;;  %v113_v3 = vadd.s32 %v1132_v19, %v1140_v24 }
  0xb9   :  { %v340_v63 = vor.u32 %v339_v43, %v338_v46  ;;  %v343_v0 = vshll.u32 %v342_v55, 23  ;;  %v921_v45 = vadd.s32 4294967294, %v125_v60  ;;  %v429_v1 = vadd.s32 %v428_v38, %v424_v62 }
  0xba   :  { %v176_v31 = vsub.s32 32, %v175_v29  ;;  %v1208_v6 = vshll.u32 %v169_v53, 8  ;;  %v143_v10 = vsub.s32 4, %v1177_v48  ;;  %v178_v14 = vshll.u32 %v993_v52, %v175_v29 }
  0xbb   :  { %v344_v2 = vor.u32 4788187, %v343_v0  ;;  %vm922_vm8 = vcmp.lt.s32.totalorder %v921_v45, 0  ;;  %v430_v5 = vadd.s32 536870912, %v429_v1  ;;  %v347_v8 = vcvt.s32.f32 %v340_v63 }
  0xbc   :  { %v128_v9 = vsel %vm922_vm8, 0, %v921_v45  ;;  %vm193_vm9 = vcmp.lt.s32.totalorder %v1204_v47, 1  ;;  %v179_v24 = vshrl.u32 %v994_v54, %v176_v31  ;;  %v181_v15 = vshll.u32 %v994_v54, %v175_v29 }
  0xbd   :  { %v345_v7 = vand.u32 2147483647, %v344_v2  ;;  %v129_v11 = vsub.s32 32, %v128_v9  ;;  %v133_v12 = vsub.s32 4294967266, %v128_v9  ;;  %v1211_v13 = vshrl.u32 %v430_v5, 30 }
  0xbe   :  { %v130_v19 = vshll.u32 %v1180_v22, %v128_v9  ;;  %v182_v21 = vshrl.u32 %v995_v57, %v176_v31  ;;  %vm59_vm10 = vcmp.lt.s32.totalorder %v1048_v17, 0  ;;  %v185_v32 = vshrl.u32 %v996_v59, %v176_v31 }
  0xbf   :  { %v131_v23 = vshrl.u32 %v113_v3, %v129_v11  ;;  %v134_v26 = vadd.s32 127, %v133_v12  ;;  %v432_v28 = vshll.u32 %v1211_v13, 30  ;;  %vm267_vm11 = vcmp.lt.s32.totalorder %v1046_v16, 0 }
  0xc0   :  { %v348_v35 = vmul.f32 %v347_v8, %v345_v7  ;;  %v180_v56 = vor.u32 %v179_v24, %v178_v14  ;;  %v183_v36 = vor.u32 %v182_v21, %v181_v15  ;;  %v184_v22 = vshll.u32 %v995_v57, %v175_v29 }
  0xc1   :  { %v132_v39 = vor.u32 %v131_v23, %v130_v19  ;;  %v135_v40 = vshll.u32 %v134_v26, 23  ;;  %v433_v54 = vsub.s32 %v429_v1, %v432_v28  ;;  %v187_v41 = vshll.u32 %v996_v59, %v175_v29 }
  0xc2   :  { %v186_v44 = vor.u32 %v185_v32, %v184_v22  ;;  %v188_v49 = vshrl.u32 %v997_v61, %v176_v31  ;;  %v190_v46 = vshll.u32 %v997_v61, %v175_v29  ;;  %v191_v51 = vshrl.u32 %v998_v4, %v176_v31 }
  0xc3   :  { %vm1230_vm12 = vcmp.le.f32.partialorder %v57_v20, 0.7853982  ;;  %v136_v43 = vor.u32 4788187, %v135_v40  ;;  %v435_v57 = vsub.s32 0, %v433_v54  ;;  %v177_v55 = vshrl.u32 %v993_v52, %v176_v31 }
  0xc4   :  { %vm194_vm13 = vcmp.lt.s32.totalorder %v1204_v47, 2  ;;  %v349_v59 = vxor.u32 2147483648, %v348_v35  ;;  %v139_v58 = vcvt.s32.f32 %v132_v39  ;;  %v189_v60 = vor.u32 %v188_v49, %v187_v41 }
  0xc5   :  { %v192_v62 = vor.u32 %v191_v51, %v190_v46  ;;  %v137_v37 = vand.u32 2147483647, %v136_v43  ;;  %v932_v61 = vmin.u32 %v435_v57, %v433_v54  ;;  %vm195_vm14 = vcmp.lt.s32.totalorder %v1204_v47, 3 }
  0xc6   :  { %vm196_vm15 = vcmp.lt.s32.totalorder %v1204_v47, 4  ;;  %v197_v20 = vsel %vm193_vm9, %v177_v55, %v180_v56  ;;  %v201_v63 = vsel %vm193_vm9, %v180_v56, %v183_v36  ;;  %v205_v2 = vsel %vm193_vm9, %v183_v36, %v186_v44 }
  0xc7   :  { %v198_v4 = vsel %vm196_vm15, %v186_v44, 2102212464  ;;  %v202_v52 = vsel %vm196_vm15, %v189_v60, 920167782  ;;  %v140_v0 = vmul.f32 %v139_v58, %v137_v37  ;;  %v437_v38 = vclz %v932_v61 }
  0xc8   :  { %v199_v45 = vsel %vm195_vm14, %v183_v36, %v198_v4  ;;  %v203_v1 = vsel %vm195_vm14, %v186_v44, %v202_v52  ;;  %v206_v3 = vsel %vm196_vm15, %v192_v62, 1326507024  ;;  %v144_v5 = vsel %vm59_vm10, %v143_v10, %v1177_v48 }
  0xc9   :  { %v204_v29 = vsel %vm194_vm13, %v201_v63, %v203_v1  ;;  %v350_v31 = vsel %vm267_vm11, %v349_v59, %v348_v35  ;;  %v141_v7 = vxor.u32 2147483648, %v140_v0  ;;  %v933_v8 = vadd.s32 4294967294, %v437_v38 }
  0xca   :  { %v207_v9 = vsel %vm195_vm14, %v189_v60, %v206_v3  ;;  %v200_v11 = vsel %vm194_vm13, %v197_v20, %v199_v45  ;;  %v1262_v14 = vmul.u32.u64.low %v1208_v6, %v204_v29  ;;  %v1263_v19 = vmul.u32.u64.high %v1208_v6, %v204_v29, %v1262_v14  ;;  %v891_v20 = vpop.permute.xlu0 %890 }
  0xcb   :  { %v208_v12 = vsel %vm194_vm13, %v205_v2, %v207_v9  ;;  %v142_v48 = vsel %vm59_vm10, %v141_v7, %v140_v0  ;;  %vm934_vm0 = vcmp.lt.s32.totalorder %v933_v8, 0  ;;  %vm1274_vm1 = vcmp.le.f32.partialorder %v265_v18, 0.7853982 }
  0xcc   :  { %v1269_v10 = vmul.u32.u64.low %v1208_v6, %v208_v12  ;;  %v1270_v24 = vmul.u32.u64.high %v1208_v6, %v208_v12, %v1269_v10  ;;  %v145_v47 = vsel %vm1230_vm12, %v1048_v17, %v142_v48  ;;  %v425_v21 = vadd.s32 %v1185_v34, %v1192_v50 }
  0xcd   :  { %v440_v23 = vsel %vm934_vm0, 0, %v933_v8  ;;  %v353_v26 = vsel %vm1274_vm1, %v1046_v16, %v350_v31  ;;  %976 = vcosq.f32 %v145_v47  ;;  %v216_v18 = vmul.u32 %v1208_v6, %v200_v11 }
  0xce   :  { %v441_v28 = vsub.s32 32, %v440_v23  ;;  %v445_v32 = vsub.s32 4294967266, %v440_v23  ;;  %978 = vsinq.f32 %v145_v47  ;;  %v219_v35 = vadd.s32 1, %v1263_v19 }
  0xcf   :  { %v146_v56 = vsel %vm1230_vm12, 0, %v144_v5  ;;  %v442_v36 = vshll.u32 %v433_v54, %v440_v23  ;;  %vm218_vm2 = vc.u32 %v1270_v24, %v1262_v14  ;;  %980 = vcosq.f32 %v353_v26 }
  0xd0   :  { %v443_v22 = vshrl.u32 %v425_v21, %v441_v28  ;;  %v446_v39 = vadd.s32 127, %v445_v32  ;;  %v220_v34 = vsel %vm218_vm2, %v219_v35, %v1263_v19  ;;  %v150_v44 = vadd.s32 3, %v146_v56  ;;  %v897_v19 = vpop.permute.xlu0 %896 }
  0xd1   :  { %v221_v41 = vadd.s32 %v220_v34, %v216_v18  ;;  %v351_v6 = vsub.s32 4, %v1143_v27  ;;  %982 = vsinq.f32 %v353_v26  ;;  %v455_v51 = vsub.s32 4, %v1211_v13 }
  0xd2   :  { %v444_v50 = vor.u32 %v443_v22, %v442_v36  ;;  %v447_v40 = vshll.u32 %v446_v39, 23  ;;  %v151_v57 = vand.u32 3, %v150_v44  ;;  %v566_v55 = vand.u32 3, %v146_v56 }
  0xd3   :  { %v222_v46 = vadd.s32 536870912, %v221_v41  ;;  %v352_v59 = vsel %vm267_vm11, %v351_v6, %v1143_v27  ;;  %vm371_vm3 = vcmp.lt.s32.totalorder %v1056_v25, 0  ;;  %vm1304_vm4 = vcmp.le.f32.partialorder %v369_v30, 0.7853982 }
  0xd4   :  { %v448_v49 = vor.u32 4788187, %v447_v40  ;;  %v451_v53 = vcvt.s32.f32 %v444_v50  ;;  %vm909_vm5 = vcmask 130048   ;;  %vm149_vm6 = vweird.f32 %v1048_v17 }
  0xd5   :  { %v1295_v43 = vshrl.u32 %v222_v46, 30  ;;  %v456_v27 = vsel %vm371_vm3, %v455_v51, %v1211_v13  ;;  %v354_v38 = vsel %vm1274_vm1, 0, %v352_v59  ;;  %vm152_vm7 = vcmp.lt.s32.totalorder %v151_v57, 2 }
  0xd6   :  { %v449_v54 = vand.u32 2147483647, %v448_v49  ;;  %vm153_vm8 = vcmp.eq.s32.totalorder %v151_v57, 0  ;;  %vm156_vm9 = vcmp.eq.s32.totalorder %v151_v57, 2  ;;  %vm568_vm10 = vcmp.eq.s32.totalorder %v566_v55, 0 }
  0xd7   :  { %v977_v58 = vpop.eup %976  ;;  %v224_v62 = vshll.u32 %v1295_v43, 30  ;;  %v458_v13 = vsel %vm1304_vm4, 0, %v456_v27  ;;  %vm571_vm11 = vcmp.eq.s32.totalorder %v566_v55, 2  ;;  %v358_v5 = vadd.s32 3, %v354_v38 }
  0xd8   :  { %v452_v60 = vmul.f32 %v451_v53, %v449_v54  ;;  %v979_v37 = vpop.eup %978  ;;  %v157_v4 = vxor.u32 2147483648, %v977_v58  ;;  %vm357_vm12 = vweird.f32 %v1046_v16  ;;  %v462_v12 = vadd.s32 3, %v458_v13 }
  0xd9   :  { %v1312_v52 = vsub.s32 %v221_v41, %v224_v62  ;;  %v154_v0 = vxor.u32 2147483648, %v979_v37  ;;  %v981_v29 = vpop.eup %980  ;;  %v772_v48 = vand.u32 3, %v354_v38  ;;  %v217_v10 = vadd.s32 %v1262_v14, %v1270_v24  ;;  %v1333_v14 = vpop.permute.xlu1 %893 }
  0xda   :  { %v453_v63 = vxor.u32 2147483648, %v452_v60  ;;  %v158_v1 = vsel %vm156_vm9, %v157_v4, %v979_v37  ;;  %v573_v9 = vsel %vm571_vm11, %v157_v4, %v979_v37  ;;  %vm567_vm13 = vcmp.lt.s32.totalorder %v566_v55, 2 }
  0xdb   :  { %v227_v45 = vsub.s32 0, %v1312_v52  ;;  %v155_v3 = vsel %vm153_vm8, %v977_v58, %v154_v0  ;;  %v983_v31 = vpop.eup %982  ;;  %v570_v8 = vsel %vm568_vm10, %v977_v58, %v154_v0  ;;  %vm901_vm14 = vcmp.eq.s32.totalorder %v891_v20, 1 }
  0xdc   :  { %v454_v30 = vsel %vm371_vm3, %v453_v63, %v452_v60  ;;  %v159_v11 = vsel %vm152_vm7, %v155_v3, %v158_v1  ;;  %v574_v21 = vsel %vm567_vm13, %v570_v8, %v573_v9  ;;  %v362_v23 = vxor.u32 2147483648, %v983_v31 }
  0xdd   :  { %v457_v2 = vsel %vm1304_vm4, %v1056_v25, %v454_v30  ;;  %v924_v7 = vmin.u32 %v227_v45, %v1312_v52  ;;  %v160_v47 = vsel %vm149_vm6, nan, %v159_v11  ;;  %v365_v26 = vxor.u32 2147483648, %v981_v29  ;;  %v900_v60 = vpop.permute.xlu1 %899 }
  0xde   :  { %984 = vcosq.f32 %v457_v2  ;;  %v575_v32 = vsel %vm149_vm6, nan, %v574_v21  ;;  %v359_v18 = vand.u32 3, %v358_v5  ;;  %vm903_vm15 = vcmp.eq.s32.totalorder %v897_v19, 1 }
  0xdf   :  { %986 = vsinq.f32 %v457_v2  ;;  %v229_v15 = vclz %v924_v7  ;;  %v905_v35 = vsel %vm901_vm14, %v160_v47, %v575_v32  ;;  %v463_v56 = vand.u32 3, %v462_v12 }
  0xe0   :  { %v875_v36 = vand.u32 3, %v458_v13  ;;  %vm774_vm0 = vcmp.eq.s32.totalorder %v772_v48, 0  ;;  %910 = vst.msk [vmem:[%s1370_s3] sm:$0xff] %vm909_vm5, %v905_v35  ;;  %vm360_vm2 = vcmp.lt.s32.totalorder %v359_v18, 2  ;;  %vm361_vm3 = vcmp.eq.s32.totalorder %v359_v18, 0 }
  0xe1   :  { %v925_v28 = vadd.s32 4294967294, %v229_v15  ;;  %vm364_vm4 = vcmp.eq.s32.totalorder %v359_v18, 2  ;;  %v363_v17 = vsel %vm361_vm3, %v981_v29, %v362_v23  ;;  %v776_v39 = vsel %vm774_vm0, %v981_v29, %v362_v23 }
  0xe2   :  { %v366_v22 = vsel %vm364_vm4, %v365_v26, %v983_v31  ;;  %vm777_vm6 = vcmp.eq.s32.totalorder %v772_v48, 2  ;;  %vm876_vm7 = vcmp.lt.s32.totalorder %v875_v36, 2  ;;  %vm773_vm8 = vcmp.lt.s32.totalorder %v772_v48, 2 }
  0xe3   :  { %vm926_vm1 = vcmp.lt.s32.totalorder %v925_v28, 0  ;;  %v367_v40 = vsel %vm360_vm2, %v363_v17, %v366_v22  ;;  %v779_v44 = vsel %vm777_vm6, %v365_v26, %v983_v31  ;;  %vm468_vm9 = vcmp.eq.s32.totalorder %v463_v56, 2 }
  0xe4   :  { %v232_v24 = vsel %vm926_vm1, 0, %v925_v28  ;;  %v368_v41 = vsel %vm357_vm12, nan, %v367_v40  ;;  %v780_v54 = vsel %vm773_vm8, %v776_v39, %v779_v44  ;;  %vm880_vm10 = vcmp.eq.s32.totalorder %v875_v36, 2 }
  0xe5   :  { %v233_v34 = vsub.s32 32, %v232_v24  ;;  %v237_v50 = vsub.s32 4294967266, %v232_v24  ;;  %v234_v49 = vshll.u32 %v1312_v52, %v232_v24  ;;  %v781_v55 = vsel %vm357_vm12, nan, %v780_v54 }
  0xe6   :  { %v907_v37 = vsel %vm903_vm15, %v368_v41, %v781_v55  ;;  %vm465_vm11 = vcmp.eq.s32.totalorder %v463_v56, 0  ;;  %vm877_vm13 = vcmp.eq.s32.totalorder %v875_v36, 0  ;;  %vm464_vm14 = vcmp.lt.s32.totalorder %v463_v56, 2 }
  0xe7   :  { %v235_v46 = vshrl.u32 %v217_v10, %v233_v34  ;;  %v238_v51 = vadd.s32 127, %v237_v50  ;;  %912 = vst.msk [vmem:[%s1370_s3 + $0x10] sm:$0xff] %vm909_vm5, %v907_v37  ;;  %vm461_vm12 = vweird.f32 %v1056_v25  ;;  %vm904_vm0 = vcmp.eq.s32.totalorder %v900_v60, 1 }
  0xe8   :  { %v985_v6 = vpop.eup %984  ;;  %v247_v29 = vsub.s32 4, %v1295_v43  ;;  %vm163_vm15 = vcmp.lt.s32.totalorder %v1062_v33, 0  ;;  %vm162_vm1 = vcmp.le.f32.partialorder %v161_v42, 0.7853982 }
  0xe9   :  { %v987_v53 = vpop.eup %986  ;;  %v469_v57 = vxor.u32 2147483648, %v985_v6  ;;  %v236_v59 = vor.u32 %v235_v46, %v234_v49  ;;  %v239_v58 = vshll.u32 %v238_v51, 23 }
  0xea   :  { %v466_v62 = vxor.u32 2147483648, %v987_v53  ;;  %v248_v3 = vsel %vm163_vm15, %v247_v29, %v1295_v43 }
  0xeb   :  { %v470_v61 = vsel %vm468_vm9, %v469_v57, %v987_v53  ;;  %v882_v20 = vsel %vm880_vm10, %v469_v57, %v987_v53  ;;  %v240_v4 = vor.u32 4788187, %v239_v58  ;;  %v243_v38 = vcvt.s32.f32 %v236_v59 }
  0xec   :  { %v467_v27 = vsel %vm465_vm11, %v985_v6, %v466_v62  ;;  %v879_v16 = vsel %vm877_vm13, %v985_v6, %v466_v62  ;;  %v250_v31 = vsel %vm162_vm1, 0, %v248_v3  ;;  %vm253_vm9 = vweird.f32 %v1062_v33 }
  0xed   :  { %v471_v63 = vsel %vm464_vm14, %v467_v27, %v470_v61  ;;  %v883_v52 = vsel %vm876_vm7, %v879_v16, %v882_v20  ;;  %v241_v0 = vand.u32 2147483647, %v240_v4  ;;  %v254_v7 = vadd.s32 3, %v250_v31 }
  0xee   :  { %v472_v30 = vsel %vm461_vm12, nan, %v471_v63  ;;  %v884_v45 = vsel %vm461_vm12, nan, %v883_v52  ;;  %v669_v9 = vand.u32 3, %v250_v31  ;;  %vm902_vm10 = vcmp.eq.s32.totalorder %v1333_v14, 1 }
  0xef   :  { %v908_v1 = vsel %vm904_vm0, %v472_v30, %v884_v45  ;;  %v244_v13 = vmul.f32 %v243_v38, %v241_v0  ;;  %v255_v8 = vand.u32 3, %v254_v7 }
  0xf0   :  { %913 = vst.msk [vmem:[%s1370_s3 + $0x18] sm:$0xff] %vm909_vm5, %v908_v1  ;;  %vm674_vm3 = vcmp.eq.s32.totalorder %v669_v9, 2  ;;  %vm671_vm6 = vcmp.eq.s32.totalorder %v669_v9, 0  ;;  %vm670_vm8 = vcmp.lt.s32.totalorder %v669_v9, 2 }
  0xf1   :  { %v245_v2 = vxor.u32 2147483648, %v244_v13  ;;  %vm260_vm2 = vcmp.eq.s32.totalorder %v255_v8, 2  ;;  %vm257_vm4 = vcmp.eq.s32.totalorder %v255_v8, 0  ;;  %vm256_vm7 = vcmp.lt.s32.totalorder %v255_v8, 2 }
  0xf3   :  { %v246_v25 = vsel %vm163_vm15, %v245_v2, %v244_v13 }
  0xf4   :  { %v249_v5 = vsel %vm162_vm1, %v1062_v33, %v246_v25 }
  0xf5   :  { %988 = vcosq.f32 %v249_v5 }
  0xf6   :  { %990 = vsinq.f32 %v249_v5 }
  0xff   :  { %v989_v11 = vpop.eup %988 }
 0x100   :  { %v991_v12 = vpop.eup %990  ;;  %v261_v19 = vxor.u32 2147483648, %v989_v11 }
 0x101   :  { %v258_v48 = vxor.u32 2147483648, %v991_v12 }
 0x102   :  { %v262_v10 = vsel %vm260_vm2, %v261_v19, %v991_v12  ;;  %v676_v42 = vsel %vm674_vm3, %v261_v19, %v991_v12 }
 0x103   :  { %v259_v43 = vsel %vm257_vm4, %v989_v11, %v258_v48  ;;  %v673_v15 = vsel %vm671_vm6, %v989_v11, %v258_v48 }
 0x104   :  { %v263_v47 = vsel %vm256_vm7, %v259_v43, %v262_v10  ;;  %v677_v21 = vsel %vm670_vm8, %v673_v15, %v676_v42 }
 0x105   :  { %v264_v23 = vsel %vm253_vm9, nan, %v263_v47  ;;  %v678_v26 = vsel %vm253_vm9, nan, %v677_v21 }
 0x106   :  { %v906_v28 = vsel %vm902_vm10, %v264_v23, %v678_v26 }
 0x107   :  { %911 = vst.msk [vmem:[%s1370_s3 + $0x8] sm:$0xff] %vm909_vm5, %v906_v28 }

</bundles_post_ra>
